<compile_context>
chip_gen: v5e
topology: v5e:2x2
jax: 0.10.0
libtpu: 0.0.40
codegen_flags: <defaults>
</compile_context>

<pallas_src>
import functools
import math

import jax
import jax.numpy as jnp
from jax.experimental import pallas as pl
from jax.experimental.pallas import tpu as pltpu


def _mha_kernel(x_ref, emb_ref, wq_ref, bq_ref, wk_ref, bk_ref,
                wv_ref, bv_ref, wo_ref, bo_ref, out_ref, *, num_heads):
    # x_ref:   (TB, S, E)  query block (TB batch elements)
    # emb_ref: (TB, N, K)  key/value block
    # wq_ref: (E, E)  wk_ref/wv_ref: (K, E)  wo_ref: (E, E); biases: (1, E)
    # out_ref: (TB, S, E)
    TB, S, E = x_ref.shape
    N = emb_ref.shape[1]
    K = emb_ref.shape[2]
    hd = E // num_heads
    scale = 1.0 / math.sqrt(hd)

    # ---- q/k/v projections as dense 2-D matmuls (fills MXU sublanes) ----
    x2 = x_ref[...].reshape(TB * S, E)                     # (TB*S, E)
    e2 = emb_ref[...].reshape(TB * N, K)                   # (TB*N, K)

    q = (jnp.dot(x2, wq_ref[...], preferred_element_type=jnp.float32)
         + bq_ref[...]).reshape(TB, S, E)
    k = (jnp.dot(e2, wk_ref[...], preferred_element_type=jnp.float32)
         + bk_ref[...]).reshape(TB, N, E)
    v = (jnp.dot(e2, wv_ref[...], preferred_element_type=jnp.float32)
         + bv_ref[...]).reshape(TB, N, E)

    # ---- scaled-dot-product attention, per head (static Python loop) ----
    head_outs = []
    for h in range(num_heads):
        sl = slice(h * hd, (h + 1) * hd)
        qh = q[:, :, sl]                                   # (TB, S, hd)
        kh = k[:, :, sl]                                   # (TB, N, hd)
        vh = v[:, :, sl]                                   # (TB, N, hd)
        s = jnp.einsum("bsd,bnd->bsn", qh, kh,
                       preferred_element_type=jnp.float32) * scale
        m = jnp.max(s, axis=-1, keepdims=True)
        p = jnp.exp(s - m)
        denom = jnp.sum(p, axis=-1, keepdims=True)
        p = p * pl.reciprocal(denom, approx=False)
        head_outs.append(jnp.einsum("bsn,bnd->bsd", p, vh,
                                    preferred_element_type=jnp.float32))
    o = head_outs[0] if num_heads == 1 else jnp.concatenate(head_outs, axis=-1)

    # ---- output projection, again as one dense 2-D matmul ----
    o2 = o.reshape(TB * S, E)
    y = jnp.dot(o2, wo_ref[...], preferred_element_type=jnp.float32) + bo_ref[...]
    out_ref[...] = y.reshape(TB, S, E)


def _mha_project(x_sbe, emb_nbk, params, *, num_heads=1):
    """One cross-attention: query=x_sbe (S,B,E), key=value=emb_nbk (N,B,K)."""
    wq_t, bq, wk_t, bk, wv_t, bv, wo_t, bo = params
    S, B, E = x_sbe.shape
    N, _, K = emb_nbk.shape
    assert E % num_heads == 0
    # embeddings serve as both key and value, so vdim projection must accept K
    assert wv_t.shape[0] == K and wk_t.shape[0] == K

    # Layout plumbing outside the kernel: batch-major, feature on lanes.
    x_bse = jnp.transpose(x_sbe, (1, 0, 2))                # (B, S, E)
    emb_bnk = jnp.transpose(emb_nbk, (1, 0, 2))            # (B, N, K)

    # Block TB batch elements per grid step (largest divisor of B up to 8).
    tb = max(d for d in range(1, min(B, 8) + 1) if B % d == 0)
    grid = (B // tb,)

    flops = 2 * B * (S * E * E            # q proj
                     + 2 * N * K * E      # k, v proj
                     + 2 * S * N * E      # scores + p@v
                     + S * E * E)         # out proj
    bytes_accessed = 4 * (2 * B * S * E + B * N * K
                          + 2 * E * E + 2 * K * E + 4 * E)
    cost = pl.CostEstimate(flops=flops,
                           transcendentals=B * S * N,
                           bytes_accessed=bytes_accessed)

    out_bse = pl.pallas_call(
        functools.partial(_mha_kernel, num_heads=num_heads),
        out_shape=jax.ShapeDtypeStruct((B, S, E), jnp.float32),
        grid_spec=pltpu.PrefetchScalarGridSpec(
            num_scalar_prefetch=0,
            grid=grid,
            in_specs=[
                pl.BlockSpec((tb, S, E), lambda b: (b, 0, 0)),   # x
                pl.BlockSpec((tb, N, K), lambda b: (b, 0, 0)),   # embeddings
                pl.BlockSpec((E, E), lambda b: (0, 0)),          # wq (in,out)
                pl.BlockSpec((1, E), lambda b: (0, 0)),          # bq
                pl.BlockSpec((K, E), lambda b: (0, 0)),          # wk
                pl.BlockSpec((1, E), lambda b: (0, 0)),          # bk
                pl.BlockSpec((K, E), lambda b: (0, 0)),          # wv
                pl.BlockSpec((1, E), lambda b: (0, 0)),          # bv
                pl.BlockSpec((E, E), lambda b: (0, 0)),          # wo
                pl.BlockSpec((1, E), lambda b: (0, 0)),          # bo
            ],
            out_specs=pl.BlockSpec((tb, S, E), lambda b: (b, 0, 0)),
        ),
        compiler_params=pltpu.CompilerParams(
            dimension_semantics=("parallel",),
        ),
        cost_estimate=cost,
    )(x_bse, emb_bnk, wq_t, bq, wk_t, bk, wv_t, bv, wo_t, bo)

    return jnp.transpose(out_bse, (1, 0, 2))               # back to (S, B, E)


def visit_latent_space_projector(x_d, x_p, embeddings, params_d, params_p,
                                 *, num_heads=1):
    """Matches VisitLatentSpaceProjector.forward: returns (visit_d, visit_p)."""
    visit_d = _mha_project(x_d, embeddings, params_d, num_heads=num_heads)
    visit_p = _mha_project(x_p, embeddings, params_p, num_heads=num_heads)
    return visit_d, visit_p


def _mha_ref(x_sbe, emb_nbk, params, num_heads):
    """Pure-JAX reference matching torch.nn.MultiheadAttention (dropout=0)."""
    wq_t, bq, wk_t, bk, wv_t, bv, wo_t, bo = params
    S, B, E = x_sbe.shape
    N = emb_nbk.shape[0]
    hd = E // num_heads
    q = jnp.einsum("sbe,ef->sbf", x_sbe, wq_t) + bq
    k = jnp.einsum("nbk,kf->nbf", emb_nbk, wk_t) + bk
    v = jnp.einsum("nbk,kf->nbf", emb_nbk, wv_t) + bv
    qh = q.reshape(S, B, num_heads, hd)
    kh = k.reshape(N, B, num_heads, hd)
    vh = v.reshape(N, B, num_heads, hd)
    scores = jnp.einsum("sbhd,nbhd->bhsn", qh, kh) / jnp.sqrt(jnp.float32(hd))
    p = jax.nn.softmax(scores, axis=-1)
    o = jnp.einsum("bhsn,nbhd->sbhd", p, vh).reshape(S, B, E)
    return jnp.einsum("sbe,ef->sbf", o, wo_t) + bo


if __name__ == "__main__":
    # Small, module-consistent shapes: seq S=8, batch B=2, embed_dim E=32,
    # N=16 graph-node embeddings with key_dim = value_dim = 24, num_heads=1.
    S, B, E = 8, 2, 32
    N, KD = 16, 24
    num_heads = 1

    key = jax.random.PRNGKey(0)
    ks = jax.random.split(key, 19)

    x_d = jax.random.normal(ks[0], (S, B, E), dtype=jnp.float32)
    x_p = jax.random.normal(ks[1], (S, B, E), dtype=jnp.float32)
    embeddings = jax.random.normal(ks[2], (N, B, KD), dtype=jnp.float32)

    def make_params(kset):
        wq_t = jax.random.normal(kset[0], (E, E), dtype=jnp.float32) * 0.05
        bq = jax.random.normal(kset[1], (1, E), dtype=jnp.float32) * 0.01
        wk_t = jax.random.normal(kset[2], (KD, E), dtype=jnp.float32) * 0.05
        bk = jax.random.normal(kset[3], (1, E), dtype=jnp.float32) * 0.01
        wv_t = jax.random.normal(kset[4], (KD, E), dtype=jnp.float32) * 0.05
        bv = jax.random.normal(kset[5], (1, E), dtype=jnp.float32) * 0.01
        wo_t = jax.random.normal(kset[6], (E, E), dtype=jnp.float32) * 0.05
        bo = jax.random.normal(kset[7], (1, E), dtype=jnp.float32) * 0.01
        return (wq_t, bq, wk_t, bk, wv_t, bv, wo_t, bo)

    params_d = make_params(ks[3:11])
    params_p = make_params(ks[11:19])

    out_d, out_p = visit_latent_space_projector(
        x_d, x_p, embeddings, params_d, params_p, num_heads=num_heads)
    out_d, out_p = jax.block_until_ready((out_d, out_p))

    ref_d = _mha_ref(x_d, embeddings, params_d, num_heads)
    ref_p = _mha_ref(x_p, embeddings, params_p, num_heads)

    assert out_d.shape == (S, B, E) and out_p.shape == (S, B, E)
    assert jnp.allclose(out_d, ref_d, atol=1e-4, rtol=1e-4), "visit_d mismatch"
    assert jnp.allclose(out_p, ref_p, atol=1e-4, rtol=1e-4), "visit_p mismatch"

    print("KERNEL_OK")
</pallas_src>

<mosaic_0001>
module attributes {stable_mosaic.version = 11 : i64} {
  func.func @_mha_kernel(%arg0: i32, %arg1: memref<2x8x32xf32, #tpu.memory_space<vmem>>, %arg2: memref<2x16x24xf32, #tpu.memory_space<vmem>>, %arg3: memref<32x32xf32, #tpu.memory_space<vmem>>, %arg4: memref<1x32xf32, #tpu.memory_space<vmem>>, %arg5: memref<24x32xf32, #tpu.memory_space<vmem>>, %arg6: memref<1x32xf32, #tpu.memory_space<vmem>>, %arg7: memref<24x32xf32, #tpu.memory_space<vmem>>, %arg8: memref<1x32xf32, #tpu.memory_space<vmem>>, %arg9: memref<32x32xf32, #tpu.memory_space<vmem>>, %arg10: memref<1x32xf32, #tpu.memory_space<vmem>>, %arg11: memref<2x8x32xf32, #tpu.memory_space<vmem>>) attributes {dimension_semantics = [#tpu.dimension_semantics<parallel>], iteration_bounds = array<i64: 1>, scalar_prefetch = 0 : i64, scratch_operands = 0 : i64, tpu.core_type = #tpu.core_type<tc>, window_params = [{transform_indices = @transform_0, window_bounds = array<i64: 2, 8, 32>}, {transform_indices = @transform_1, window_bounds = array<i64: 2, 16, 24>}, {pipeline_mode = #tpu.pipeline_mode<synchronous>, transform_indices = @transform_2, window_bounds = array<i64: 32, 32>}, {pipeline_mode = #tpu.pipeline_mode<synchronous>, transform_indices = @transform_3, window_bounds = array<i64: 1, 32>}, {pipeline_mode = #tpu.pipeline_mode<synchronous>, transform_indices = @transform_4, window_bounds = array<i64: 24, 32>}, {pipeline_mode = #tpu.pipeline_mode<synchronous>, transform_indices = @transform_5, window_bounds = array<i64: 1, 32>}, {pipeline_mode = #tpu.pipeline_mode<synchronous>, transform_indices = @transform_6, window_bounds = array<i64: 24, 32>}, {pipeline_mode = #tpu.pipeline_mode<synchronous>, transform_indices = @transform_7, window_bounds = array<i64: 1, 32>}, {pipeline_mode = #tpu.pipeline_mode<synchronous>, transform_indices = @transform_8, window_bounds = array<i64: 32, 32>}, {pipeline_mode = #tpu.pipeline_mode<synchronous>, transform_indices = @transform_9, window_bounds = array<i64: 1, 32>}, {transform_indices = @transform_10, window_bounds = array<i64: 2, 8, 32>}]} {
    %c0 = arith.constant 0 : index
    %c0_0 = arith.constant 0 : index
    %c0_1 = arith.constant 0 : index
    %0 = vector.load %arg1[%c0, %c0_0, %c0_1] : memref<2x8x32xf32, #tpu.memory_space<vmem>>, vector<2x8x32xf32>
    %1 = vector.shape_cast %0 : vector<2x8x32xf32> to vector<16x32xf32>
    %c0_2 = arith.constant 0 : index
    %c0_3 = arith.constant 0 : index
    %c0_4 = arith.constant 0 : index
    %2 = vector.load %arg2[%c0_2, %c0_3, %c0_4] : memref<2x16x24xf32, #tpu.memory_space<vmem>>, vector<2x16x24xf32>
    %3 = vector.shape_cast %2 : vector<2x16x24xf32> to vector<32x24xf32>
    %c0_5 = arith.constant 0 : index
    %c0_6 = arith.constant 0 : index
    %4 = vector.load %arg3[%c0_5, %c0_6] : memref<32x32xf32, #tpu.memory_space<vmem>>, vector<32x32xf32>
    %cst = arith.constant dense<0.000000e+00> : vector<16x32xf32>
    %5 = tpu.matmul %1, %4, %cst {dimension_numbers = #tpu.dot_dimension_numbers<[1], [0], [0], [1], [0, 0, 1, 1], [], []>} : vector<16x32xf32>, vector<32x32xf32>, vector<16x32xf32> -> vector<16x32xf32>
    %c0_7 = arith.constant 0 : index
    %c0_8 = arith.constant 0 : index
    %6 = vector.load %arg4[%c0_7, %c0_8] : memref<1x32xf32, #tpu.memory_space<vmem>>, vector<1x32xf32>
    %7 = vector.broadcast %6 : vector<1x32xf32> to vector<16x32xf32>
    %8 = arith.addf %5, %7 : vector<16x32xf32>
    %9 = vector.shape_cast %8 : vector<16x32xf32> to vector<2x8x32xf32>
    %c0_9 = arith.constant 0 : index
    %c0_10 = arith.constant 0 : index
    %10 = vector.load %arg5[%c0_9, %c0_10] : memref<24x32xf32, #tpu.memory_space<vmem>>, vector<24x32xf32>
    %cst_11 = arith.constant dense<0.000000e+00> : vector<32x32xf32>
    %11 = tpu.matmul %3, %10, %cst_11 {dimension_numbers = #tpu.dot_dimension_numbers<[1], [0], [0], [1], [0, 0, 1, 1], [], []>} : vector<32x24xf32>, vector<24x32xf32>, vector<32x32xf32> -> vector<32x32xf32>
    %c0_12 = arith.constant 0 : index
    %c0_13 = arith.constant 0 : index
    %12 = vector.load %arg6[%c0_12, %c0_13] : memref<1x32xf32, #tpu.memory_space<vmem>>, vector<1x32xf32>
    %13 = vector.broadcast %12 : vector<1x32xf32> to vector<32x32xf32>
    %14 = arith.addf %11, %13 : vector<32x32xf32>
    %15 = vector.shape_cast %14 : vector<32x32xf32> to vector<2x16x32xf32>
    %c0_14 = arith.constant 0 : index
    %c0_15 = arith.constant 0 : index
    %16 = vector.load %arg7[%c0_14, %c0_15] : memref<24x32xf32, #tpu.memory_space<vmem>>, vector<24x32xf32>
    %cst_16 = arith.constant dense<0.000000e+00> : vector<32x32xf32>
    %17 = tpu.matmul %3, %16, %cst_16 {dimension_numbers = #tpu.dot_dimension_numbers<[1], [0], [0], [1], [0, 0, 1, 1], [], []>} : vector<32x24xf32>, vector<24x32xf32>, vector<32x32xf32> -> vector<32x32xf32>
    %c0_17 = arith.constant 0 : index
    %c0_18 = arith.constant 0 : index
    %18 = vector.load %arg8[%c0_17, %c0_18] : memref<1x32xf32, #tpu.memory_space<vmem>>, vector<1x32xf32>
    %19 = vector.broadcast %18 : vector<1x32xf32> to vector<32x32xf32>
    %20 = arith.addf %17, %19 : vector<32x32xf32>
    %21 = vector.shape_cast %20 : vector<32x32xf32> to vector<2x16x32xf32>
    "tpu.trace_start"() <{level = 10 : i32, message = "bsd,bnd->bsn"}> : () -> ()
    %cst_19 = arith.constant dense<0.000000e+00> : vector<2x8x16xf32>
    %22 = tpu.matmul %9, %15, %cst_19 {dimension_numbers = #tpu.dot_dimension_numbers<[2], [2], [1], [1], [0, 0, 0, 1, 1, 1], [0], [0]>} : vector<2x8x32xf32>, vector<2x16x32xf32>, vector<2x8x16xf32> -> vector<2x8x16xf32>
    "tpu.trace_stop"() : () -> ()
    %cst_20 = arith.constant 0.176776692 : f32
    %23 = vector.broadcast %cst_20 : f32 to vector<2x8x16xf32>
    %24 = arith.mulf %22, %23 : vector<2x8x16xf32>
    %cst_21 = arith.constant dense<0xFF800000> : vector<2x8xf32>
    %25 = vector.multi_reduction <maximumf>, %24, %cst_21 [2] : vector<2x8x16xf32> to vector<2x8xf32>
    %26 = vector.shape_cast %25 : vector<2x8xf32> to vector<2x8x1xf32>
    %27 = vector.broadcast %26 : vector<2x8x1xf32> to vector<2x8x16xf32>
    %28 = arith.subf %24, %27 : vector<2x8x16xf32>
    %29 = math.exp %28 : vector<2x8x16xf32>
    %cst_22 = arith.constant dense<0.000000e+00> : vector<2x8xf32>
    %30 = vector.multi_reduction <add>, %29, %cst_22 [2] : vector<2x8x16xf32> to vector<2x8xf32>
    %31 = vector.shape_cast %30 : vector<2x8xf32> to vector<2x8x1xf32>
    %32 = tpu.reciprocal %31 : vector<2x8x1xf32> -> vector<2x8x1xf32>
    %33 = vector.broadcast %32 : vector<2x8x1xf32> to vector<2x8x16xf32>
    %34 = arith.mulf %29, %33 : vector<2x8x16xf32>
    "tpu.trace_start"() <{level = 10 : i32, message = "bsn,bnd->bsd"}> : () -> ()
    %cst_23 = arith.constant dense<0.000000e+00> : vector<2x8x32xf32>
    %35 = tpu.matmul %34, %21, %cst_23 {dimension_numbers = #tpu.dot_dimension_numbers<[2], [1], [1], [2], [0, 0, 0, 1, 1, 2], [0], [0]>} : vector<2x8x16xf32>, vector<2x16x32xf32>, vector<2x8x32xf32> -> vector<2x8x32xf32>
    "tpu.trace_stop"() : () -> ()
    %36 = vector.shape_cast %35 : vector<2x8x32xf32> to vector<16x32xf32>
    %c0_24 = arith.constant 0 : index
    %c0_25 = arith.constant 0 : index
    %37 = vector.load %arg9[%c0_24, %c0_25] : memref<32x32xf32, #tpu.memory_space<vmem>>, vector<32x32xf32>
    %cst_26 = arith.constant dense<0.000000e+00> : vector<16x32xf32>
    %38 = tpu.matmul %36, %37, %cst_26 {dimension_numbers = #tpu.dot_dimension_numbers<[1], [0], [0], [1], [0, 0, 1, 1], [], []>} : vector<16x32xf32>, vector<32x32xf32>, vector<16x32xf32> -> vector<16x32xf32>
    %c0_27 = arith.constant 0 : index
    %c0_28 = arith.constant 0 : index
    %39 = vector.load %arg10[%c0_27, %c0_28] : memref<1x32xf32, #tpu.memory_space<vmem>>, vector<1x32xf32>
    %40 = vector.broadcast %39 : vector<1x32xf32> to vector<16x32xf32>
    %41 = arith.addf %38, %40 : vector<16x32xf32>
    %42 = vector.shape_cast %41 : vector<16x32xf32> to vector<2x8x32xf32>
    %c0_29 = arith.constant 0 : index
    %c0_30 = arith.constant 0 : index
    %c0_31 = arith.constant 0 : index
    %43 = vector.load %arg11[%c0_29, %c0_30, %c0_31] : memref<2x8x32xf32, #tpu.memory_space<vmem>>, vector<2x8x32xf32>
    tpu.vector_store %arg11[%c0_29, %c0_30, %c0_31], %42 {strides = array<i32>} : memref<2x8x32xf32, #tpu.memory_space<vmem>>, vector<2x8x32xf32>,
    return
  }
  func.func @transform_0(%arg0: i32) -> (i32, i32, i32) {
    %c0_i32 = arith.constant 0 : i32
    %c0_i32_0 = arith.constant 0 : i32
    %c0_i32_1 = arith.constant 0 : i32
    return %arg0, %c0_i32, %c0_i32_0 : i32, i32, i32
  }
  func.func @transform_1(%arg0: i32) -> (i32, i32, i32) {
    %c0_i32 = arith.constant 0 : i32
    %c0_i32_0 = arith.constant 0 : i32
    %c0_i32_1 = arith.constant 0 : i32
    return %arg0, %c0_i32, %c0_i32_0 : i32, i32, i32
  }
  func.func @transform_2(%arg0: i32) -> (i32, i32) {
    %c0_i32 = arith.constant 0 : i32
    %c0_i32_0 = arith.constant 0 : i32
    %c0_i32_1 = arith.constant 0 : i32
    return %c0_i32, %c0_i32_0 : i32, i32
  }
  func.func @transform_3(%arg0: i32) -> (i32, i32) {
    %c0_i32 = arith.constant 0 : i32
    %c0_i32_0 = arith.constant 0 : i32
    %c0_i32_1 = arith.constant 0 : i32
    return %c0_i32, %c0_i32_0 : i32, i32
  }
  func.func @transform_4(%arg0: i32) -> (i32, i32) {
    %c0_i32 = arith.constant 0 : i32
    %c0_i32_0 = arith.constant 0 : i32
    %c0_i32_1 = arith.constant 0 : i32
    return %c0_i32, %c0_i32_0 : i32, i32
  }
  func.func @transform_5(%arg0: i32) -> (i32, i32) {
    %c0_i32 = arith.constant 0 : i32
    %c0_i32_0 = arith.constant 0 : i32
    %c0_i32_1 = arith.constant 0 : i32
    return %c0_i32, %c0_i32_0 : i32, i32
  }
  func.func @transform_6(%arg0: i32) -> (i32, i32) {
    %c0_i32 = arith.constant 0 : i32
    %c0_i32_0 = arith.constant 0 : i32
    %c0_i32_1 = arith.constant 0 : i32
    return %c0_i32, %c0_i32_0 : i32, i32
  }
  func.func @transform_7(%arg0: i32) -> (i32, i32) {
    %c0_i32 = arith.constant 0 : i32
    %c0_i32_0 = arith.constant 0 : i32
    %c0_i32_1 = arith.constant 0 : i32
    return %c0_i32, %c0_i32_0 : i32, i32
  }
  func.func @transform_8(%arg0: i32) -> (i32, i32) {
    %c0_i32 = arith.constant 0 : i32
    %c0_i32_0 = arith.constant 0 : i32
    %c0_i32_1 = arith.constant 0 : i32
    return %c0_i32, %c0_i32_0 : i32, i32
  }
  func.func @transform_9(%arg0: i32) -> (i32, i32) {
    %c0_i32 = arith.constant 0 : i32
    %c0_i32_0 = arith.constant 0 : i32
    %c0_i32_1 = arith.constant 0 : i32
    return %c0_i32, %c0_i32_0 : i32, i32
  }
  func.func @transform_10(%arg0: i32) -> (i32, i32, i32) {
    %c0_i32 = arith.constant 0 : i32
    %c0_i32_0 = arith.constant 0 : i32
    %c0_i32_1 = arith.constant 0 : i32
    return %arg0, %c0_i32, %c0_i32_0 : i32, i32, i32
  }
}

</mosaic_0001>

<bundles_post_ra>
// kernel: tpu_custom_call.1
= control target key start
LH: loop header
LB: loop body
LE: loop exit
PB: predicated region body
PF: predicated region fallthrough
CT: control target
= control target key end

     0   :  { %15 = vsyncpa [#allocation3], 0  ;;  %s842_s0 = inlined_call_operand.hbm [shape: f32[2,8,32], index: 0, kind: input, shape index: {}]   ;;  %s843_s1 = inlined_call_operand.hbm [shape: f32[2,16,24], index: 1, kind: input, shape index: {}]   ;;  %s844_s2 = inlined_call_operand.hbm [shape: f32[32,32], index: 2, kind: input, shape index: {}]   ;;  %s845_s3 = inlined_call_operand.vmem [shape: f32[1,32], index: 3, kind: input, shape index: {}]   ;;  %s846_s4 = inlined_call_operand.hbm [shape: f32[24,32], index: 4, kind: input, shape index: {}]   ;;  %s847_s5 = inlined_call_operand.vmem [shape: f32[1,32], index: 5, kind: input, shape index: {}]   ;;  %s848_s6 = inlined_call_operand.hbm [shape: f32[24,32], index: 6, kind: input, shape index: {}]   ;;  %s849_s7 = inlined_call_operand.vmem [shape: f32[1,32], index: 7, kind: input, shape index: {}]   ;;  %s850_s8 = inlined_call_operand.hbm [shape: f32[32,32], index: 8, kind: input, shape index: {}]   ;;  %s851_s9 = inlined_call_operand.vmem [shape: f32[1,32], index: 9, kind: input, shape index: {}]   ;;  %s852_s10 = inlined_call_operand.hbm [shape: f32[2,8,32], index: 10, kind: output, shape index: {}]  }
   0x1   :  { %16 = vsyncpa [#allocation6], 0 }
   0x2   :  { %17 = vsyncpa [#allocation9], 0 }
   0x3   :  { %18 = vsyncpa [#allocation12], 0 }
   0x4   :  { %19 = vsyncpa [#allocation4], 0  ;;  %s37_s15 = sshll.u32 %s843_s1, 4  ;;  %s698_s16 = smov [#allocation5]   ;;  %s38_s15 = int_to_ptr.hbm [resolvable:$true] %s37_s15 }
   0x5   :  { %s39_s17 = sshll.u32 %s698_s16, 4  ;;  %s65_s20 = sshll.u32 %s846_s4, 4  ;;  %s40_s17 = int_to_ptr.vmem [resolvable:$true] %s39_s17  ;;  %s66_s20 = int_to_ptr.hbm [resolvable:$true] %s65_s20 }
   0x6   :  { %s699_s21 = smov 128   ;;  %s700_s22 = smov 8  }
   0x7   :  { %45 = dma.hbm_to_vmem [thread:$0]  %s38_s15, 512, %s40_s17, [#allocation6], %s699_s21, %s699_s21, %s700_s22  }
   0x8   :  { %s701_s23 = smov [#allocation8]   ;;  %s24_s1 = sshll.u32 %s842_s0, 4  ;;  %s25_s1 = int_to_ptr.hbm [resolvable:$true] %s24_s1 }
   0x9   :  { %s67_s24 = sshll.u32 %s701_s23, 4  ;;  %s50_s28 = sshll.u32 %s844_s2, 4  ;;  %s68_s24 = int_to_ptr.vmem [resolvable:$true] %s67_s24  ;;  %s51_s28 = int_to_ptr.hbm [resolvable:$true] %s50_s28 }
   0xa   :  { %73 = dma.hbm_to_vmem [thread:$0]  %s66_s20, 384, %s68_s24, [#allocation9], %s699_s21, %s699_s21, %s700_s22  }
   0xb   :  { %s702_s29 = smov [#allocation2]   ;;  %s703_s11 = smov [#allocation7]  }
   0xc   :  { %s26_s30 = sshll.u32 %s702_s29, 4  ;;  %s52_s0 = sshll.u32 %s703_s11, 4  ;;  %s27_s30 = int_to_ptr.vmem [resolvable:$true] %s26_s30  ;;  %s53_s0 = int_to_ptr.vmem [resolvable:$true] %s52_s0 }
   0xd   :  { %32 = dma.hbm_to_vmem [thread:$0]  %s25_s1, 256, %s27_s30, [#allocation3], %s699_s21, %s699_s21, %s700_s22  }
   0xe   :  { %s80_s14 = sshll.u32 %s848_s6, 4  ;;  %s95_s16 = sshll.u32 %s850_s8, 4  ;;  %s81_s14 = int_to_ptr.hbm [resolvable:$true] %s80_s14  ;;  %s96_s16 = int_to_ptr.hbm [resolvable:$true] %s95_s16 }
   0xf   :  { %58 = dma.hbm_to_vmem [thread:$0]  %s51_s28, 512, %s53_s0, [#allocation6], %s699_s21, %s699_s21, %s700_s22  }
  0x10   :  { %s704_s17 = smov [#allocation10]   ;;  %s705_s19 = smov [#allocation11]  }
  0x11   :  { %s82_s18 = sshll.u32 %s704_s17, 4  ;;  %s97_s6 = sshll.u32 %s705_s19, 4  ;;  %s83_s18 = int_to_ptr.vmem [resolvable:$true] %s82_s18  ;;  %s98_s6 = int_to_ptr.vmem [resolvable:$true] %s97_s6 }
  0x12   :  { %88 = dma.hbm_to_vmem [thread:$0]  %s81_s14, 384, %s83_s18, [#allocation9], %s699_s21, %s699_s21, %s700_s22  }
  0x13   :  { %103 = dma.hbm_to_vmem [thread:$0]  %s96_s16, 512, %s98_s6, [#allocation12], %s699_s21, %s699_s21, %s700_s22  }
  0x14   :  { %688 = dma.done.wait [#allocation3], 256  }
  0x15   :  { %689 = vsyncadd [#allocation3], 4294967040 }
  0x16   :  { %690 = dma.done.wait [#allocation6], 1024  }
  0x17   :  { %691 = vsyncadd [#allocation6], 4294966272 }
  0x18   :  { %692 = dma.done.wait [#allocation9], 768  }
  0x19   :  { %693 = vsyncadd [#allocation9], 4294966528 }
  0x1a   :  { %694 = dma.done.wait [#allocation12], 512  }
  0x1b   :  { %695 = vsyncadd [#allocation12], 4294966784  ;;  %v176_v0 = vld [vmem:[#allocation8 + $0x10] sm:$0xff]  ;;  %v175_v1 = vld [vmem:[#allocation8 + $0x8] sm:$0xff]  ;;  %vm181_vm0 = vcmask 195584   ;;  %vm144_vm1 = vcmask 261120  }
  0x1c   :  { %207 = vmatpush.msra.mxu1 %v176_v0  ;;  %v139_v2 = vld [vmem:[#allocation7 + $0x18] sm:$0xff]  ;;  %v174_v3 = vld [vmem:[#allocation8] sm:$0xff]  ;;  %v138_v4 = vld [vmem:[#allocation7 + $0x10] sm:$0xff]  ;;  %vm319_vm2 = vcmask 130048   ;;  %s706_s26 = smov [#allocation13]   ;;  %s459_s28 = sshll.u32 %s852_s10, 4  ;;  %s460_s28 = int_to_ptr.hbm [resolvable:$true] %s459_s28 }
  0x1d   :  { %163 = vmatpush.msra.mxu0 %v139_v2  ;;  %495 = vmatpush.msra.mxu3 %v139_v2  ;;  %v132_v5 = vld [vmem:[#allocation5] sm:$0xff]  ;;  %v137_v6 = vld [vmem:[#allocation7 + $0x8] sm:$0xff]  ;;  %v130_v8 = vld [vmem:[#allocation2] sm:$0xff]  ;;  %s457_s1 = sshll.u32 %s706_s26, 4  ;;  %s458_s1 = int_to_ptr.vmem [resolvable:$true] %s457_s1 }
  0x1e   :  { %208 = vmatpush.msra.mxu1 %v175_v1  ;;  %v136_v7 = vld [vmem:[#allocation7] sm:$0xff]  ;;  %v131_v9 = vld [vmem:[#allocation2 + $0x8] sm:$0xff]  ;;  %v133_v10 = vld [vmem:[#allocation5 + $0x8] sm:$0xff] }
  0x1f   :  { %164 = vmatpush.msra.mxu0 %v138_v4  ;;  %496 = vmatpush.msra.mxu3 %v138_v4  ;;  %v134_v11 = vld [vmem:[#allocation5 + $0x10] sm:$0xff]  ;;  %v135_v12 = vld [vmem:[#allocation5 + $0x18] sm:$0xff]  ;;  %v225_v27 = vld [vmem:[#allocation10 + $0x10] sm:$0xff] }
  0x20   :  { %209 = vmatpush.msra.mxu1 %v174_v3  ;;  %v508_v14 = vld [vmem:[%s847_s5] ss:$0 sm:$0xff]  ;;  %v224_v28 = vld [vmem:[#allocation10 + $0x8] sm:$0xff]  ;;  %243 = vmatpush.msra.mxu2 %v225_v27  ;;  %v223_v29 = vld [vmem:[#allocation10] sm:$0xff] }
  0x21   :  { %477 = vmatmul.msk.f32.vlgmr.msra.gmra.mxu1 %vm181_vm0, %v132_v5  ;;  %165 = vmatpush.msra.mxu0 %v137_v6  ;;  %v509_v17 = vld [vmem:[%s845_s3] ss:$0 sm:$0xff]  ;;  %v417_v56 = vld [vmem:[#allocation11 + $0x18] sm:$0xff]  ;;  %v416_v57 = vld [vmem:[#allocation11 + $0x10] sm:$0xff] }
  0x22   :  { %497 = vmatpush.msra.mxu3 %v137_v6  ;;  %244 = vmatpush.msra.mxu2 %v224_v28  ;;  %v510_v41 = vld [vmem:[%s849_s7] ss:$0 sm:$0xff]  ;;  %v415_v58 = vld [vmem:[#allocation11 + $0x8] sm:$0xff] }
  0x23   :  { %166 = vmatpush.msra.mxu0 %v136_v7 }
  0x24   :  { %475 = vmatmul.msk.f32.vlgmr.msra.gmra.mxu0 %vm144_vm1, %v130_v8  ;;  %498 = vmatpush.msra.mxu3 %v136_v7 }
  0x25   :  { %476 = vmatmul.msk.f32.vlgmr.msra.gmra.mxu3 %vm144_vm1, %v131_v9  ;;  %245 = vmatpush.msra.mxu2 %v223_v29 }
  0x26   :  { %481 = vmatmul.msk.f32.vlgmr.msra.gmra.mxu2 %vm181_vm0, %v132_v5 }
  0x29   :  { %478 = vmatmul.msk.f32.gmra.mxu1 %vm181_vm0, %v133_v10 }
  0x2e   :  { %482 = vmatmul.msk.f32.gmra.mxu2 %vm181_vm0, %v133_v10 }
  0x31   :  { %479 = vmatmul.msk.f32.gmra.mxu1 %vm181_vm0, %v134_v11 }
  0x36   :  { %483 = vmatmul.msk.f32.gmra.mxu2 %vm181_vm0, %v134_v11 }
  0x39   :  { %480 = vmatmul.msk.f32.gmra.mxu1 %vm181_vm0, %v135_v12 }
  0x3e   :  { %484 = vmatmul.msk.f32.gmra.mxu2 %vm181_vm0, %v135_v12 }
  0x9e   :  { %v211_v13 = vpop.f32.mrf.mxu1 }
  0x9f   :  { %v212_v19 = vadd.f32 %v508_v14, %v211_v13 }
  0xa1   :  { %v168_v18 = vpop.f32.mrf.mxu0 }
  0xa2   :  { %v169_v20 = vadd.f32 %v509_v17, %v168_v18  ;;  %v414_v18 = vld [vmem:[#allocation11] sm:$0xff] }
  0xa6   :  { %v214_v15 = vpop.f32.mrf.mxu1 }
  0xa7   :  { %v215_v16 = vadd.f32 %v508_v14, %v214_v15 }
  0xa8   :  { %v171_v24 = vpop.f32.mrf.mxu3 }
  0xa9   :  { %485 = vmatpush.xpose.msk.msrb.mxu3 %vm144_vm1, %v215_v16  ;;  %v172_v26 = vadd.f32 %v509_v17, %v171_v24  ;;  %v247_v39 = vpop.f32.mrf.mxu2 }
  0xaa   :  { %v248_v44 = vadd.f32 %v510_v41, %v247_v39 }
  0xad   :  { %486 = vmatpush.xpose.msk.msrb.mxu3 %vm144_vm1, %v212_v19 }
  0xae   :  { %v217_v21 = vpop.f32.mrf.mxu1 }
  0xaf   :  { %v218_v25 = vadd.f32 %v508_v14, %v217_v21  ;;  %v511_v21 = vld [vmem:[%s851_s9] ss:$0 sm:$0xff] }
  0xb0   :  { %487 = vmatmul.msk.f32.vlgmr.msrb.gmra.mxu3 %vm144_vm1, %v169_v20 }
  0xb1   :  { %v250_v43 = vpop.f32.mrf.mxu2 }
  0xb2   :  { %v251_v45 = vadd.f32 %v510_v41, %v250_v43 }
  0xb4   :  { %385 = vmatpush.msrb.mxu0 %v251_v45 }
  0xb6   :  { %v220_v22 = vpop.f32.mrf.mxu1  ;;  %386 = vmatpush.msrb.mxu0 %v248_v44 }
  0xb7   :  { %v221_v23 = vadd.f32 %v508_v14, %v220_v22 }
  0xb8   :  { %440 = vmatpush.msra.mxu0 %v417_v56 }
  0xb9   :  { %488 = vmatpush.xpose.msk.msra.mxu3 %vm144_vm1, %v221_v23  ;;  %v253_v51 = vpop.f32.mrf.mxu2 }
  0xba   :  { %v254_v53 = vadd.f32 %v510_v41, %v253_v51  ;;  %441 = vmatpush.msra.mxu0 %v416_v57 }
  0xbc   :  { %442 = vmatpush.msra.mxu0 %v415_v58 }
  0xbd   :  { %489 = vmatpush.xpose.msk.msra.mxu3 %vm144_vm1, %v218_v25 }
  0xbe   :  { %443 = vmatpush.msra.mxu0 %v414_v18 }
  0xc0   :  { %490 = vmatmul.msk.f32.vlgmr.msra.gmra.mxu3 %vm144_vm1, %v172_v26 }
  0xc1   :  { %v256_v52 = vpop.f32.mrf.mxu2 }
  0xc2   :  { %v257_v54 = vadd.f32 %v510_v41, %v256_v52 }
  0xc4   :  { %408 = vmatpush.msrb.mxu3 %v257_v54 }
  0xc6   :  { %409 = vmatpush.msrb.mxu3 %v254_v53 }
 0x133   :  { %v285_v30 = vpop.f32.mrf.mxu3 }
 0x134   :  { %v317_v31 = vmul.f32 0.17677669, %v285_v30 }
 0x136   :  { %v320_v32 = vsel %vm319_vm2, %v317_v31, -inf }
 0x137   :  { %321 = vmax.xlane.f32.xlu0 %v320_v32 }
 0x143   :  { %v314_v33 = vpop.f32.mrf.mxu3 }
 0x144   :  { %v318_v34 = vmul.f32 0.17677669, %v314_v33 }
 0x146   :  { %v323_v35 = vsel %vm319_vm2, %v318_v34, -inf }
 0x147   :  { %324 = vmax.xlane.f32.xlu0 %v323_v35 }
 0x1aa   :  { %v322_v36 = vpop.xlane.xlu0 %321 }
 0x1ab   :  { %v326_v37 = vsub.f32 %v317_v31, %v322_v36 }
 0x1ad   :  { %v328_v38 = vmul.f32 1.442695, %v326_v37 }
 0x1af   :  { %512 = vpow2.f32 %v328_v38 }
 0x1b5   :  { %v513_v40 = vpop.eup %512 }
 0x1b6   :  { %v332_v42 = vsel %vm319_vm2, %v513_v40, 0.0 }
 0x1b7   :  { %333 = vadd.xlane.f32.xlu1 %v332_v42 }
 0x1ba   :  { %v325_v46 = vpop.xlane.xlu0 %324 }
 0x1bb   :  { %v327_v47 = vsub.f32 %v318_v34, %v325_v46 }
 0x1bd   :  { %v330_v48 = vmul.f32 1.442695, %v327_v47 }
 0x1bf   :  { %514 = vpow2.f32 %v330_v48 }
 0x1c5   :  { %v515_v49 = vpop.eup %514 }
 0x1c6   :  { %v335_v50 = vsel %vm319_vm2, %v515_v49, 0.0 }
 0x1c7   :  { %336 = vadd.xlane.f32.xlu1 %v335_v50 }
 0x22a   :  { %v334_v55 = vpop.xlane.xlu1 %333 }
 0x22b   :  { %516 = vrcp.f32 %v334_v55  ;;  %v349_v63 = vand.u32 2147483648, %v334_v55  ;;  %v347_v0 = vand.u32 2147483647, %v334_v55  ;;  %vm343_vm4 = vweird.f32 %v334_v55 }
 0x22d   :  { %v350_v2 = vor.u32 1.1754944e-38, %v349_v63  ;;  %vm348_vm6 = vcmp.eq.f32.partialorder %v347_v0, 8.507059e+37 }
 0x231   :  { %v517_v59 = vpop.eup %516 }
 0x232   :  { %v339_v60 = vmul.f32 %v517_v59, %v334_v55  ;;  %vm344_vm3 = vweird.f32 %v517_v59 }
 0x233   :  { %vm345_vm5 = vmor %vm343_vm4, %vm344_vm3 }
 0x234   :  { %v340_v61 = vsub.f32 1.0, %v339_v60 }
 0x236   :  { %v341_v62 = vmul.f32 %v517_v59, %v340_v61 }
 0x238   :  { %v342_v1 = vadd.f32 %v517_v59, %v341_v62 }
 0x23a   :  { %v337_v3 = vpop.xlane.xlu1 %336  ;;  %v346_v4 = vsel %vm345_vm5, %v517_v59, %v342_v1 }
 0x23b   :  { %518 = vrcp.f32 %v337_v3  ;;  %v351_v5 = vsel %vm348_vm6, %v350_v2, %v346_v4  ;;  %v363_v10 = vand.u32 2147483648, %v337_v3  ;;  %v361_v12 = vand.u32 2147483647, %v337_v3 }
 0x23c   :  { %v366_v6 = vmul.f32 %v513_v40, %v351_v5  ;;  %vm357_vm8 = vweird.f32 %v337_v3 }
 0x23d   :  { %v364_v14 = vor.u32 1.1754944e-38, %v363_v10  ;;  %vm362_vm10 = vcmp.eq.f32.partialorder %v361_v12, 8.507059e+37 }
 0x23e   :  { %491 = vmatmul.msk.f32.vlgmr.msrb.gmra.mxu0 %vm319_vm2, %v366_v6 }
 0x241   :  { %v519_v7 = vpop.eup %518 }
 0x242   :  { %v353_v8 = vmul.f32 %v519_v7, %v337_v3  ;;  %vm358_vm7 = vweird.f32 %v519_v7 }
 0x243   :  { %vm359_vm9 = vmor %vm357_vm8, %vm358_vm7 }
 0x244   :  { %v354_v9 = vsub.f32 1.0, %v353_v8 }
 0x246   :  { %v355_v11 = vmul.f32 %v519_v7, %v354_v9 }
 0x248   :  { %v356_v13 = vadd.f32 %v519_v7, %v355_v11 }
 0x24a   :  { %v360_v15 = vsel %vm359_vm9, %v519_v7, %v356_v13 }
 0x24b   :  { %v365_v16 = vsel %vm362_vm10, %v364_v14, %v360_v15 }
 0x24c   :  { %v367_v17 = vmul.f32 %v515_v49, %v365_v16 }
 0x24e   :  { %492 = vmatmul.msk.f32.vlgmr.msrb.gmra.mxu3 %vm319_vm2, %v367_v17 }
 0x2bb   :  { %v388_v19 = vpop.f32.mrf.mxu0 }
 0x2bc   :  { %493 = vmatmul.msk.f32.vlgmr.msra.gmra.mxu0 %vm144_vm1, %v388_v19 }
 0x2d1   :  { %v411_v20 = vpop.f32.mrf.mxu3 }
 0x2d2   :  { %494 = vmatmul.msk.f32.gmra.mxu0 %vm144_vm1, %v411_v20 }
 0x339   :  { %v445_v22 = vpop.f32.mrf.mxu0 }
 0x33a   :  { %v446_v23 = vadd.f32 %v511_v21, %v445_v22 }
 0x33c   :  { %451 = vst.msk [vmem:[#allocation13] sm:$0xff] %vm144_vm1, %v446_v23 }
 0x34f   :  { %v448_v24 = vpop.f32.mrf.mxu0 }
 0x350   :  { %v449_v25 = vadd.f32 %v511_v21, %v448_v24 }
 0x352   :  { %452 = vst.msk [vmem:[#allocation13 + $0x8] sm:$0xff] %vm144_vm1, %v449_v25 }
 0x353   :  { %465 = dma.vmem_to_hbm [thread:$0]  %s458_s1, 256, %s460_s28, [#allocation4], %s699_s21, %s699_s21, %s700_s22  }
 0x354   :  { %696 = dma.done.wait [#allocation4], 256  }
 0x355   :  { %697 = vsyncadd [#allocation4], 4294967040 }
 0x356   :  { %470 = vsyncpa [#allocation3], 1 }
 0x357   :  { %471 = vsyncpa [#allocation6], 1 }
 0x358   :  { %472 = vsyncpa [#allocation9], 1 }
 0x359   :  { %473 = vsyncpa [#allocation12], 1 }
 0x35a   :  { %474 = vsyncpa [#allocation4], 1 }

</bundles_post_ra>
